<compile_context>
chip_gen: v5e
topology: v5e:2x2
jax: 0.10.0
libtpu: 0.0.40
codegen_flags: <defaults>
</compile_context>

<pallas_src>
import jax
import jax.numpy as jnp
from jax.experimental import pallas as pl
from jax.experimental.pallas import tpu as pltpu


def _predict_kernel(wmu_ref, wv_ref, xt_ref, o_ref):
    # wmu_ref, wv_ref: (D+1,) f32 in SMEM  (last entry = bias weight, 0 if no bias)
    # xt_ref:          (D, TILE_N) f32 in VMEM (N lane-dense)
    # o_ref:           (2, TILE_N) f32 in VMEM (row 0 = ppmu, row 1 = ppscale)
    d_feat = xt_ref.shape[0]
    xv = xt_ref[...]                                   # (D, TILE_N)

    # D broadcast-FMAs on the VPU (static unroll; D is tiny for this model).
    mu = xv[0:1, :] * wmu_ref[0]
    var = xv[0:1, :] * wv_ref[0]
    for d in range(1, d_feat):
        mu = mu + xv[d:d + 1, :] * wmu_ref[d]
        var = var + xv[d:d + 1, :] * wv_ref[d]

    # Bias column of x_ is all ones -> contributes the last weight entry.
    mu = mu + wmu_ref[d_feat]
    var = var + wv_ref[d_feat]

    o_ref[0:1, :] = mu
    o_ref[1:2, :] = jnp.sqrt(var)                      # fused sqrt -> EUP (idle slot)


def _round_up(v, m):
    return ((v + m - 1) // m) * m


def linear_regression_forward(x, np1, np2, include_bias=True, tile_n=32768):
    """Pallas-backed equivalent of LinearRegressionModel.forward.

    Args:
      x:   (N, D) float32 input locations.
      np1: (P,)   first natural parameter of q(theta), P = D+1 if include_bias else D.
      np2: (P, P) second natural parameter of q(theta).
    Returns:
      (ppmu, ppscale): mean and scale of the predictive Normal, each shape (N,).
    """
    x = jnp.asarray(x, jnp.float32)
    np1 = jnp.asarray(np1, jnp.float32)
    np2 = jnp.asarray(np2, jnp.float32)
    N, D = x.shape

    # ---- glue (plain JAX): tiny P x P linear solve, stacked RHS ----------------
    # TODO(synk): torch.linalg.solve has no Pallas equivalent; the tiny PxP solve stays in JAX.
    prec = -2.0 * np2                                               # (P, P)
    if include_bias:
        x0_ = jnp.concatenate([x[0], jnp.ones((1,), jnp.float32)])  # (P,)
    else:
        x0_ = x[0]                                                  # (P,)
    sol = jnp.linalg.solve(prec, jnp.stack([np1, x0_], axis=1))     # (P, 2)
    mu_1 = sol[:, 0]                                                # (P,)
    v0 = sol[:, 1]                                                  # (P,)  == solve(prec, x_[0])

    # Always carry a "bias weight" slot so the kernel is shape-static (D+1 entries).
    if include_bias:
        wmu, wv = mu_1, v0                                          # (D+1,)
    else:
        zero = jnp.zeros((1,), jnp.float32)
        wmu = jnp.concatenate([mu_1, zero])
        wv = jnp.concatenate([v0, zero])

    # ---- lane-dense layout: N on the lane axis --------------------------------
    x_t = x.T                                                       # (D, N)

    tile_n = min(int(tile_n), _round_up(N, 128))
    tile_n = max(128, _round_up(tile_n, 128))
    n_tiles = pl.cdiv(N, tile_n)
    n_pad = n_tiles * tile_n
    if n_pad != N:
        # Only materialized when N is not a multiple of the tile.
        x_t = jnp.pad(x_t, ((0, 0), (0, n_pad - N)))

    P = D + 1
    cost = pl.CostEstimate(
        flops=4 * N * P,                 # two matvecs, 2 flops/element
        transcendentals=N,               # sqrt
        bytes_accessed=(N * D + 2 * N + 2 * P) * 4,
    )

    out = pl.pallas_call(
        _predict_kernel,
        out_shape=jax.ShapeDtypeStruct((2, n_pad), jnp.float32),
        grid=(n_tiles,),
        in_specs=[
            pl.BlockSpec(memory_space=pltpu.MemorySpace.SMEM),      # wmu (D+1,)
            pl.BlockSpec(memory_space=pltpu.MemorySpace.SMEM),      # wv  (D+1,)
            pl.BlockSpec((D, tile_n), lambda i: (0, i)),            # x^T tile (lane-dense)
        ],
        out_specs=pl.BlockSpec((2, tile_n), lambda i: (0, i)),
        compiler_params=pltpu.CompilerParams(
            dimension_semantics=("parallel",)),                     # 2x on v7x dual-TC
        cost_estimate=cost,
    )(wmu, wv, x_t)

    ppmu = out[0, :N]                    # (N,)
    ppscale = out[1, :N]                 # (N,)  == sqrt(ppvar)
    return ppmu, ppscale


if __name__ == "__main__":
    key = jax.random.PRNGKey(0)
    k1, k2, k3 = jax.random.split(key, 3)

    # small shapes: N=384 data points, D=4 input features, include_bias -> P=5
    # (tile_n=128 so the grid has 3 tiles and exercises the pipeline).
    N, D = 384, 4
    P = D + 1

    x = jax.random.normal(k1, (N, D), jnp.float32)

    # deterministic synthetic q(theta) natural parameters (np2 negative-definite
    # so that prec = -2*np2 is SPD, matching a valid Gaussian posterior)
    A = jax.random.normal(k2, (P, P), jnp.float32)
    prec = A @ A.T + P * jnp.eye(P, dtype=jnp.float32)
    np2 = -0.5 * prec
    np1 = jax.random.normal(k3, (P,), jnp.float32)

    ppmu, ppscale = linear_regression_forward(x, np1, np2, include_bias=True, tile_n=128)
    ppmu, ppscale = jax.block_until_ready((ppmu, ppscale))

    # reference check against plain-JAX replication of the PyTorch forward
    x_ = jnp.concatenate([x, jnp.ones((N, 1), jnp.float32)], axis=1)
    mu_1_ref = jnp.linalg.solve(prec, np1[:, None])
    v0_ref = jnp.linalg.solve(prec, x_[0][:, None])
    ref_mu = (x_ @ mu_1_ref)[:, 0]
    ref_var = (x_ @ v0_ref)[:, 0]
    ref_scale = jnp.sqrt(ref_var)        # NaN where ref_var < 0, same as the torch module
    assert jnp.allclose(ppmu, ref_mu, atol=1e-5, rtol=1e-5)
    assert jnp.allclose(ppscale, ref_scale, atol=1e-5, rtol=1e-5, equal_nan=True)

    print("KERNEL_OK")
</pallas_src>

<mosaic_0001>
module attributes {stable_mosaic.version = 11 : i64} {
  func.func @_predict_kernel(%arg0: i32, %arg1: memref<5xf32, #tpu.memory_space<smem>>, %arg2: memref<5xf32, #tpu.memory_space<smem>>, %arg3: memref<4x128xf32, #tpu.memory_space<vmem>>, %arg4: memref<2x128xf32, #tpu.memory_space<vmem>>) attributes {dimension_semantics = [#tpu.dimension_semantics<parallel>], iteration_bounds = array<i64: 3>, scalar_prefetch = 0 : i64, scratch_operands = 0 : i64, tpu.core_type = #tpu.core_type<tc>, window_params = [{transform_indices = @transform_0, window_bounds = array<i64: 5>}, {transform_indices = @transform_1, window_bounds = array<i64: 5>}, {transform_indices = @transform_2, window_bounds = array<i64: 4, 128>}, {transform_indices = @transform_3, window_bounds = array<i64: 2, 128>}]} {
    %c0 = arith.constant 0 : index
    %c0_0 = arith.constant 0 : index
    %0 = vector.load %arg3[%c0, %c0_0] : memref<4x128xf32, #tpu.memory_space<vmem>>, vector<4x128xf32>
    %1 = vector.extract_strided_slice %0 {offsets = [0, 0], sizes = [1, 128], strides = [1, 1]} : vector<4x128xf32> to vector<1x128xf32>
    %c0_1 = arith.constant 0 : index
    %2 = memref.load %arg1[%c0_1] : memref<5xf32, #tpu.memory_space<smem>>
    %3 = vector.broadcast %2 : f32 to vector<1x128xf32>
    %4 = arith.mulf %1, %3 : vector<1x128xf32>
    %5 = vector.extract_strided_slice %0 {offsets = [0, 0], sizes = [1, 128], strides = [1, 1]} : vector<4x128xf32> to vector<1x128xf32>
    %c0_2 = arith.constant 0 : index
    %6 = memref.load %arg2[%c0_2] : memref<5xf32, #tpu.memory_space<smem>>
    %7 = vector.broadcast %6 : f32 to vector<1x128xf32>
    %8 = arith.mulf %5, %7 : vector<1x128xf32>
    %9 = vector.extract_strided_slice %0 {offsets = [1, 0], sizes = [1, 128], strides = [1, 1]} : vector<4x128xf32> to vector<1x128xf32>
    %c1 = arith.constant 1 : index
    %10 = memref.load %arg1[%c1] : memref<5xf32, #tpu.memory_space<smem>>
    %11 = vector.broadcast %10 : f32 to vector<1x128xf32>
    %12 = arith.mulf %9, %11 : vector<1x128xf32>
    %13 = arith.addf %4, %12 : vector<1x128xf32>
    %14 = vector.extract_strided_slice %0 {offsets = [1, 0], sizes = [1, 128], strides = [1, 1]} : vector<4x128xf32> to vector<1x128xf32>
    %c1_3 = arith.constant 1 : index
    %15 = memref.load %arg2[%c1_3] : memref<5xf32, #tpu.memory_space<smem>>
    %16 = vector.broadcast %15 : f32 to vector<1x128xf32>
    %17 = arith.mulf %14, %16 : vector<1x128xf32>
    %18 = arith.addf %8, %17 : vector<1x128xf32>
    %19 = vector.extract_strided_slice %0 {offsets = [2, 0], sizes = [1, 128], strides = [1, 1]} : vector<4x128xf32> to vector<1x128xf32>
    %c2 = arith.constant 2 : index
    %20 = memref.load %arg1[%c2] : memref<5xf32, #tpu.memory_space<smem>>
    %21 = vector.broadcast %20 : f32 to vector<1x128xf32>
    %22 = arith.mulf %19, %21 : vector<1x128xf32>
    %23 = arith.addf %13, %22 : vector<1x128xf32>
    %24 = vector.extract_strided_slice %0 {offsets = [2, 0], sizes = [1, 128], strides = [1, 1]} : vector<4x128xf32> to vector<1x128xf32>
    %c2_4 = arith.constant 2 : index
    %25 = memref.load %arg2[%c2_4] : memref<5xf32, #tpu.memory_space<smem>>
    %26 = vector.broadcast %25 : f32 to vector<1x128xf32>
    %27 = arith.mulf %24, %26 : vector<1x128xf32>
    %28 = arith.addf %18, %27 : vector<1x128xf32>
    %29 = vector.extract_strided_slice %0 {offsets = [3, 0], sizes = [1, 128], strides = [1, 1]} : vector<4x128xf32> to vector<1x128xf32>
    %c3 = arith.constant 3 : index
    %30 = memref.load %arg1[%c3] : memref<5xf32, #tpu.memory_space<smem>>
    %31 = vector.broadcast %30 : f32 to vector<1x128xf32>
    %32 = arith.mulf %29, %31 : vector<1x128xf32>
    %33 = arith.addf %23, %32 : vector<1x128xf32>
    %34 = vector.extract_strided_slice %0 {offsets = [3, 0], sizes = [1, 128], strides = [1, 1]} : vector<4x128xf32> to vector<1x128xf32>
    %c3_5 = arith.constant 3 : index
    %35 = memref.load %arg2[%c3_5] : memref<5xf32, #tpu.memory_space<smem>>
    %36 = vector.broadcast %35 : f32 to vector<1x128xf32>
    %37 = arith.mulf %34, %36 : vector<1x128xf32>
    %38 = arith.addf %28, %37 : vector<1x128xf32>
    %c4 = arith.constant 4 : index
    %39 = memref.load %arg1[%c4] : memref<5xf32, #tpu.memory_space<smem>>
    %40 = vector.broadcast %39 : f32 to vector<1x128xf32>
    %41 = arith.addf %33, %40 : vector<1x128xf32>
    %c4_6 = arith.constant 4 : index
    %42 = memref.load %arg2[%c4_6] : memref<5xf32, #tpu.memory_space<smem>>
    %43 = vector.broadcast %42 : f32 to vector<1x128xf32>
    %44 = arith.addf %38, %43 : vector<1x128xf32>
    %c0_7 = arith.constant 0 : index
    %c0_8 = arith.constant 0 : index
    %45 = vector.load %arg4[%c0_7, %c0_8] : memref<2x128xf32, #tpu.memory_space<vmem>>, vector<1x128xf32>
    tpu.vector_store %arg4[%c0_7, %c0_8], %41 {strides = array<i32>} : memref<2x128xf32, #tpu.memory_space<vmem>>, vector<1x128xf32>,
    %46 = math.sqrt %44 : vector<1x128xf32>
    %c1_9 = arith.constant 1 : index
    %c0_10 = arith.constant 0 : index
    %47 = vector.load %arg4[%c1_9, %c0_10] : memref<2x128xf32, #tpu.memory_space<vmem>>, vector<1x128xf32>
    tpu.vector_store %arg4[%c1_9, %c0_10], %46 {strides = array<i32>} : memref<2x128xf32, #tpu.memory_space<vmem>>, vector<1x128xf32>,
    return
  }
  func.func @transform_0(%arg0: i32) -> i32 {
    %c0_i32 = arith.constant 0 : i32
    %c0_i32_0 = arith.constant 0 : i32
    return %c0_i32 : i32
  }
  func.func @transform_1(%arg0: i32) -> i32 {
    %c0_i32 = arith.constant 0 : i32
    %c0_i32_0 = arith.constant 0 : i32
    return %c0_i32 : i32
  }
  func.func @transform_2(%arg0: i32) -> (i32, i32) {
    %c0_i32 = arith.constant 0 : i32
    %c0_i32_0 = arith.constant 0 : i32
    return %c0_i32, %arg0 : i32, i32
  }
  func.func @transform_3(%arg0: i32) -> (i32, i32) {
    %c0_i32 = arith.constant 0 : i32
    %c0_i32_0 = arith.constant 0 : i32
    return %c0_i32, %arg0 : i32, i32
  }
}

</mosaic_0001>

<bundles_post_ra>
// kernel: tpu_custom_call.1
= control target key start
LH: loop header
LB: loop body
LE: loop exit
PB: predicated region body
PF: predicated region fallthrough
CT: control target
= control target key end

     0   :  { %8 = vsyncpa [#allocation5], 0  ;;  %s790_s0 = inlined_call_operand.hbm [shape: f32[5], index: 0, kind: input, shape index: {}]   ;;  %s791_s1 = inlined_call_operand.hbm [shape: f32[5], index: 1, kind: input, shape index: {}]   ;;  %s792_s2 = inlined_call_operand.hbm [shape: f32[4,384], index: 2, kind: input, shape index: {}]   ;;  %s793_s3 = inlined_call_operand.hbm [shape: f32[2,384], index: 3, kind: output, shape index: {}]  }
   0x1   :  { %9 = vsyncpa [#allocation7], 0 }
   0x2   :  { %10 = vsyncpa [#allocation3], 0 }
   0x3   :  { %12 = vsyncpa [#allocation3 + $0x1], 0 }
   0x4   :  { %13 = vsyncpa [#allocation4], 0 }
   0x5   :  { %15 = vsyncpa [#allocation4 + $0x1], 0  ;;  %s643_s12 = smov 0   ;;  %s645_s13 = smov 0  }
   0x6   :  { %s647_s14 = smov 0   ;;  %s649_s15 = smov 0  }
   0x7 LB: > { %s664_s16 = sadd.s32 4294967295, %s619_s15   ;;  %s392_s17 = sadd.s32 4294967294, %s619_s15   ;;  %s619_s15 = sphi %s649_s15, %s802_s15   ;;  %s615_s14 = sphi %s647_s14, %s801_s14   ;;  %s611_s13 = sphi %s645_s13, %s800_s13   ;;  %s607_s12 = sphi %s643_s12, %s799_s12  }
   0x8   : > { %p83_p0 = scmp.ne.s32.totalorder %s611_s13, %s607_s12  ;;  %p84_p1 = scmp.eq.s32.totalorder %s664_s16, 0 }
   0x9   : > { %p107_p2 = scmp.eq.s32.totalorder %s664_s16, 2  ;;  %p113_p3 = scmp.eq.s32.totalorder %s392_s17, 2 }
   0xa   : > { %p673_p4 = por %p84_p1, %p83_p0  ;;  %p393_p5 = scmp.ge.s32.totalorder %s619_s15, 1 }
   0xb   : > { %p678_p6 = por %p113_p3, %p83_p0  ;;  %p120_p7 = scmp.lt.s32.totalorder %s619_s15, 4 }
   0xc   : > { %s132_s22 = sshll.u32 %s790_s0, 4  ;;  %s142_s26 = sshll.u32 %s791_s1, 4  ;;  %s133_s22 = int_to_ptr.hbm [resolvable:$true] %s132_s22  ;;  %s143_s26 = int_to_ptr.hbm [resolvable:$true] %s142_s26 }
   0xd   : > { %p686_p8 = pnand %p393_p5, %p120_p7  ;;  %s698_s27 = sadd.s32 1, %s619_s15  }
   0xe   : > { %s67_s28 = ssub.s32 %s619_s15, %s698_s27  ;;  %s621_s29 = smov [#allocation2]  }
   0xf   : > { %p428_p9 = pneg %p686_p8  ;;  %s622_s30 = smov [#allocation6]  }
  0x10   : > { %p68_p11 = scmp.eq.s32.totalorder %s67_s28, 0  ;;  %s70_s4 = sadd.s32 1, %s615_s14 }
  0x11   : > { %p429_p10 = pnand %p428_p9, %p84_p1  ;;  %p77_p12 = scmp.ne.s32.totalorder %s615_s14, %s611_s13 }
  0x12   : > { %p78_p13 = scmp.eq.s32.totalorder %s619_s15, 0  ;;  %p445_p5 = scmp.lt.s32.totalorder %s619_s15, 3 }
  0x13   : > { %431 = dma.hbm_to_smem (!%p429_p10), %s133_s22, 16, %s621_s29, [#allocation5]  }
  0x14   : > { %434 = dma.hbm_to_smem (!%p429_p10), %s143_s26, 16, %s622_s30, [#allocation7]  }
  0x15   : > { %s707_s5 = scalar_select %p68_p11, %s615_s14, %s70_s4  }
  0x16   : > { %p79_p0 = por %p78_p13, %p77_p12  ;;  %p711_p3 = por %p107_p2, %p77_p12 }
  0x17   : > { %s153_s7 = sand.u32 1, %s615_s14   ;;  %s398_s9 = sshll.u32 %s619_s15, 2 }
  0x18   : > { %s397_s8 = sshll.u32 %s153_s7, 2  ;;  %s161_s17 = scalar_lea.hbm %s792_s2, %s398_s9 }
  0x19   : > { %s157_s20 = scalar_lea.vmem [#allocation8], %s397_s8  ;;  %s163_s22 = sshll.u32 %s161_s17, 4  ;;  %s164_s22 = int_to_ptr.hbm [resolvable:$true] %s163_s22 }
  0x1a   : > { %s165_s21 = sshll.u32 %s157_s20, 4  ;;  %p721_p7 = pnand %p445_p5, %p79_p0  ;;  %s166_s21 = int_to_ptr.vmem [resolvable:$true] %s165_s21 }
  0x1b   : > { %s154_s25 = scalar_lea.sflag [#allocation3], %s153_s7  ;;  %s515_s26 = sshra.s32 %s164_s22, 4  ;;  %s516_s26 = int_to_ptr.hbm [resolvable:$true] %s515_s26 }
  0x1c   : > { %s517_s28 = scalar_lea.hbm %s516_s26, 4  ;;  %p519_p9 = pneg %p721_p7 }
  0x1d   : > { %p518_p2 = scmp.ne.s32.totalorder %s516_s26, %s517_s28  ;;  %s522_s4 = scalar_lea.hbm %s792_s2, 12 }
  0x1e   : > { %p523_p12 = scmp.lt.s32.totalorder %s516_s26, %s792_s2  ;;  %p524_p13 = scmp.lt.s32.totalorder %s522_s4, %s517_s28 }
  0x1f   : > { %p520_p10 = pnand %p519_p9, %p518_p2 }
  0x20   : > { %p525_p0 = por %p524_p13, %p523_p12 }
  0x21   : > { %p521_p11 = pneg %p520_p10 }
  0x23   : > { %p526_p5 = pnand %p525_p0, %p521_p11 }
  0x25   : > { %529 = shalt.err (!%p526_p5)
}
  0x26   : > { %438 = dma.hbm_to_vmem [thread:$0]  (!%p721_p7), %s164_s22, 64, %s166_s21, %s154_s25  }
  0x27   : > { %174 = sbr.rel (%p686_p8) target bundleno = 102 (0x66), region = 32 }
  0x2c   : > { %590 = dma.done.wait (%p84_p1), [#allocation5], 16  }
  0x2d   : > { %592 = vsyncadd (%p84_p1), [#allocation5], 4294967280 }
  0x2e   : > { %594 = dma.done.wait (%p84_p1), [#allocation7], 16  }
  0x2f   : > { %596 = vsyncadd (%p84_p1), [#allocation7], 4294967280  ;;  %s746_s7 = sand.u32 1, %s611_s13  }
  0x30   : > { %s402_s23 = sshll.u32 %s746_s7, 2  ;;  %s187_s10 = scalar_lea.sflag [#allocation3], %s746_s7 }
  0x31   : > { %s190_s11 = scalar_lea.vmem [#allocation8], %s402_s23 }
  0x32   : > { %598 = dma.done.wait (%p673_p4), %s187_s10, 64  }
  0x33   : > { %600 = vsyncadd (%p673_p4), %s187_s10, 4294967232 }
  0x34   : > { %196 = sfence }
  0x35   : > { %s216_s17 = sld [smem:[#allocation2]]  ;;  %v215_v1 = vld [vmem:[%s190_s11] sm:$0xf]  ;;  %s403_s30 = sshll.u32 %s746_s7, 1 }
  0x36   : > { %s404_s20 = sld [smem:[#allocation2 + $0x1]]  ;;  %s214_s4 = scalar_lea.vmem [#allocation9], %s403_s30 }
  0x37   : > { %s406_s21 = sld [smem:[#allocation2 + $0x2]]  ;;  %s413_s8 = sshll.u32 %s664_s16, 1 }
  0x38   : > { %s408_s22 = sld [smem:[#allocation2 + $0x3]]  ;;  %s295_s10 = scalar_lea.hbm %s793_s3, %s413_s8 }
  0x39   : > { %s754_s24 = sld [smem:[#allocation2 + $0x4]]  ;;  %s297_s11 = sshll.u32 %s214_s4, 4  ;;  %s298_s11 = int_to_ptr.vmem [resolvable:$true] %s297_s11 }
  0x3a   : > { %s219_s25 = sld [smem:[#allocation6]]  ;;  %s285_s16 = scalar_lea.sflag [#allocation4], %s746_s7 }
  0x3b   : > { %v217_v0 = vstv %s216_s17  ;;  %s405_s26 = sld [smem:[#allocation6 + $0x1]]  ;;  %s299_s17 = sshll.u32 %s295_s10, 4  ;;  %s300_s17 = int_to_ptr.hbm [resolvable:$true] %s299_s17 }
  0x3c   : > { %v223_v2 = vstv %s404_s20  ;;  %s407_s28 = sld [smem:[#allocation6 + $0x2]]  ;;  %v218_v3 = vmul.f32 %v217_v0, %v215_v1  ;;  %s559_s20 = sshra.s32 %s300_s17, 4  ;;  %s560_s20 = int_to_ptr.hbm [resolvable:$true] %s559_s20 }
  0x3d   : > { %v224_v4 = vmul.f32 %v223_v2, %v215_v1  ;;  %v237_v5 = vstv %s406_s21  ;;  %s409_s29 = sld [smem:[#allocation6 + $0x3]]  ;;  %s561_s21 = scalar_lea.hbm %s560_s20, 2 }
  0x3e   : > { %v238_v6 = vmul.f32 %v237_v5, %v215_v1  ;;  %v251_v7 = vstv %s408_s22  ;;  %s411_s18 = sld [smem:[#allocation6 + $0x4]]  ;;  %p562_p1 = scmp.ne.s32.totalorder %s560_s20, %s561_s21 }
  0x3f   : > { %v226_v8 = vrot.slane %v224_v4, 1  ;;  %v252_v9 = vmul.f32 %v251_v7, %v215_v1  ;;  %v265_v21 = vstv %s754_s24  ;;  %p566_p7 = scmp.lt.s32.totalorder %s560_s20, %s793_s3 }
  0x40   : > { %v240_v10 = vrot.slane %v238_v6, 2  ;;  %v220_v11 = vstv %s219_s25  ;;  %p563_p4 = pnand %p562_p1, %p711_p3  ;;  %s565_s25 = scalar_lea.hbm %s793_s3, 6 }
  0x41   : > { %v228_v12 = vadd.f32 %v226_v8, %v218_v3  ;;  %v254_v13 = vrot.slane %v252_v9, 3  ;;  %v230_v14 = vstv %s405_s26  ;;  %v221_v15 = vmul.f32 %v220_v11, %v215_v1  ;;  %p567_p2 = scmp.lt.s32.totalorder %s565_s25, %s561_s21 }
  0x42   : > { %v231_v16 = vmul.f32 %v230_v14, %v215_v1  ;;  %v244_v17 = vstv %s407_s28  ;;  %p564_p8 = pneg %p563_p4 }
  0x43   : > { %v242_v18 = vadd.f32 %v240_v10, %v228_v12  ;;  %v245_v19 = vmul.f32 %v244_v17, %v215_v1  ;;  %v258_v20 = vstv %s409_s29  ;;  %p568_p9 = por %p567_p2, %p566_p7 }
  0x44   : > { %v233_v22 = vrot.slane %v231_v16, 1  ;;  %v259_v23 = vmul.f32 %v258_v20, %v215_v1  ;;  %v268_v30 = vstv %s411_s18 }
  0x45   : > { %v256_v24 = vadd.f32 %v254_v13, %v242_v18  ;;  %v247_v25 = vrot.slane %v245_v19, 2  ;;  %p569_p10 = pnand %p568_p9, %p564_p8 }
  0x46   : > { %v235_v26 = vadd.f32 %v233_v22, %v221_v15  ;;  %v261_v27 = vrot.slane %v259_v23, 3 }
  0x47   : > { %v266_v28 = vadd.f32 %v265_v21, %v256_v24 }
  0x48   : > { %v249_v29 = vadd.f32 %v247_v25, %v235_v26 }
  0x49   : > { %270 = vst [vmem:[%s214_s4] sm:$0x1] %v266_v28 }
  0x4a   : > { %v263_v31 = vadd.f32 %v261_v27, %v249_v29 }
  0x4c   : > { %v269_v32 = vadd.f32 %v268_v30, %v263_v31 }
  0x4e   : > { %483 = vrsqrt.f32 %v269_v32  ;;  %vm278_vm0 = vcmp.eq.f32.partialorder %v269_v32, inf  ;;  %v281_v39 = vand.u32 2147483648, %v269_v32  ;;  %vm280_vm1 = vcmp.eq.f32.partialorder %v269_v32, 0.0 }
  0x54   : > { %v484_v33 = vpop.eup %483 }
  0x55   : > { %v272_v34 = vmul.f32 %v484_v33, %v269_v32 }
  0x57   : > { %v273_v35 = vmul.f32 %v484_v33, %v272_v34 }
  0x59   : > { %v274_v36 = vmul.f32 0.5, %v273_v35 }
  0x5b   : > { %v275_v37 = vsub.f32 1.5, %v274_v36 }
  0x5d   : > { %v276_v38 = vmul.f32 %v484_v33, %v275_v37 }
  0x5f   : > { %v277_v40 = vmul.f32 %v276_v38, %v269_v32 }
  0x61   : > { %v279_v41 = vsel %vm278_vm0, %v269_v32, %v277_v40 }
  0x62   : > { %v282_v42 = vsel %vm280_vm1, %v281_v39, %v279_v41 }
  0x63   : > { %283 = vst [vmem:[%s214_s4 + $0x1] sm:$0x1] %v282_v42 }
  0x64   : > { %572 = shalt.err (!%p569_p10)
}
  0x65   : > { %426 = dma.vmem_to_hbm [thread:$0]  (%p711_p3), %s298_s11, 32, %s300_s17, %s285_s16  }
  0x66 PF: > { %p448_p11 = scmp.ge.s32.totalorder %s619_s15, 2  ;;  %s311_s7 = sand.u32 1, %s607_s12  }
  0x67   : > { %s312_s29 = scalar_lea.sflag [#allocation4], %s311_s7 }
  0x68   : > { %p440_p12 = pnand %p448_p11, %p678_p6 }
  0x6a   : > { %p441_p13 = pneg %p440_p12 }
  0x6c   : > { %602 = dma.done.wait (%p441_p13), %s312_s29, 32  }
  0x6d   : > { %604 = vsyncadd (%p441_p13), %s312_s29, 4294967264  ;;  %p18_p0 = scmp.ge.s32.totalorder %s698_s27, 5   ;;  %s799_s12 = smov %s611_s13 }
  0x6e   : > { %s800_s13 = smov %s615_s14  ;;  %s801_s14 = smov %s707_s5 }
  0x6f   : > { %s802_s15 = smov %s698_s27  ;;  %20 = sbr.rel (!%p18_p0) target bundleno = 7 (0x7), region = 86 }
  0x74   :  { %318 = vsyncpa [#allocation3], 1 }
  0x75   :  { %320 = vsyncpa [#allocation3 + $0x1], 1 }
  0x76   :  { %321 = vsyncpa [#allocation4], 1 }
  0x77   :  { %323 = vsyncpa [#allocation4 + $0x1], 1 }
  0x78   :  { %324 = vsyncpa [#allocation5], 1 }
  0x79   :  { %326 = vsyncpa [#allocation5 + $0x1], 1 }
  0x7a   :  { %327 = vsyncpa [#allocation7], 1 }

</bundles_post_ra>
